<compile_context>
chip_gen: v7x
topology: tpu7x:2x2x1
jax: 0.10.0
libtpu: 0.0.40
codegen_flags: <defaults>
</compile_context>

<pallas_src>
import jax
import jax.numpy as jnp
from jax import lax
from jax.experimental import pallas as pl
from jax.experimental.pallas import tpu as pltpu

# "Small shape" stand-ins for the real model dims (768 -> 256, 512 -> 128).
H_T = 256    # BERT hidden size (stands for 768)
H_C = 128    # CLIP image-feature size (stands for 512)
N_CLS = 4    # classifier output classes
N_PAD = 128  # lane-dense padded classifier width
BATCH = 8

_NEG_BIG = -1.0e9  # padded-logit bias; exp(pad - max) underflows to exactly 0


def _bernoulli_mask(shape, seed_u32, row_offset):
    """Per-element Bernoulli(0.5) selection mask (True -> image modality),
    generated with a counter-based integer hash (pure jnp, lowers everywhere).
    Stand-in for EmbraceNet's uniform multinomial over 2 modalities."""
    row = lax.broadcasted_iota(jnp.uint32, shape, 0)
    col = lax.broadcasted_iota(jnp.uint32, shape, 1)
    g = (row + row_offset) * jnp.uint32(shape[1]) + col
    x = g ^ (seed_u32 * jnp.uint32(0x9E3779B9))
    x = x ^ (x >> jnp.uint32(16))
    x = x * jnp.uint32(0x7FEB352D)
    x = x ^ (x >> jnp.uint32(15))
    x = x * jnp.uint32(0x846CA68B)
    x = x ^ (x >> jnp.uint32(16))
    return (x & jnp.uint32(1)) != 0


def _fused_forward_kernel(seed_ref,                    # SMEM scalar prefetch
                          cls_ref, img_ref,            # activations (f32)
                          wp_ref, bp_ref,              # pooler
                          wdb_ref, bdb_ref,            # docking_bert
                          wdc_ref, bdc_ref,            # docking_clip
                          wc_ref, bc_ref,              # classifier (padded)
                          out_ref):                    # (block_b, 2*N_PAD) f32
    bf16 = jnp.bfloat16

    # --- BertParts.pooler: Linear + Tanh on CLS embedding ---
    t = jnp.dot(cls_ref[...].astype(bf16), wp_ref[...],
                preferred_element_type=jnp.float32)
    t = jnp.tanh(t + bp_ref[...])

    # --- Model.docking_bert: Linear + ReLU ---
    t = jnp.dot(t.astype(bf16), wdb_ref[...],
                preferred_element_type=jnp.float32) + bdb_ref[...]
    t = jnp.maximum(t, 0.0)

    # --- image branch: tanh -> docking_clip (Linear + ReLU) ---
    im = jnp.tanh(img_ref[...])
    im = jnp.dot(im.astype(bf16), wdc_ref[...],
                 preferred_element_type=jnp.float32) + bdc_ref[...]
    im = jnp.maximum(im, 0.0)

    # --- EmbraceNet (bypass_docking): per-dim Bernoulli(0.5) modality pick,
    #     mask generated in-kernel (no HBM mask input, no pltpu PRNG) ---
    seed_u32 = seed_ref[0].astype(jnp.uint32)
    row_offset = (pl.program_id(0) * t.shape[0]).astype(jnp.uint32)
    sel_img = _bernoulli_mask(t.shape, seed_u32, row_offset)
    emb = jnp.where(sel_img, im, t)

    # --- classifier: Linear(H_T, 4), lane-dense padded to 128 lanes ---
    # padded weight columns are 0, padded bias lanes are -1e9 so their
    # softmax contribution is exactly 0.
    logits = jnp.dot(emb.astype(bf16), wc_ref[...],
                     preferred_element_type=jnp.float32) + bc_ref[...]

    # --- softmax over dim=1 ---
    m = jnp.max(logits, axis=1, keepdims=True)
    e = jnp.exp(logits - m)
    denom = jnp.sum(e, axis=1, keepdims=True)
    probs = e / denom

    # fused lane-dense writeback: [logits_pad | probs_pad]
    out_ref[:, :N_PAD] = logits
    out_ref[:, N_PAD:] = probs


def model_forward(cls_emb, img_feats, seed, params, *, block_b=None):
    """Fused forward over a 1-D parallel batch grid. Weights use constant
    index_maps so they stay VMEM-resident across batch tiles."""
    b = cls_emb.shape[0]
    if block_b is None:
        block_b = min(128, ((b + 7) // 8) * 8)
    bp = pl.cdiv(b, block_b) * block_b
    if bp != b:
        cls_emb = jnp.pad(cls_emb, ((0, bp - b), (0, 0)))
        img_feats = jnp.pad(img_feats, ((0, bp - b), (0, 0)))
    grid = (bp // block_b,)

    def const(shape):
        return pl.BlockSpec(shape, lambda i, seed_ref: (0, 0))

    def row(shape):
        return pl.BlockSpec(shape, lambda i, seed_ref: (i, 0))

    grid_spec = pltpu.PrefetchScalarGridSpec(
        num_scalar_prefetch=1,
        grid=grid,
        in_specs=[
            row((block_b, H_T)),            # cls_emb
            row((block_b, H_C)),            # img_feats
            const((H_T, H_T)), const((1, H_T)),       # pooler
            const((H_T, H_T)), const((1, H_T)),       # docking_bert
            const((H_C, H_T)), const((1, H_T)),       # docking_clip
            const((H_T, N_PAD)), const((1, N_PAD)),   # classifier (padded)
        ],
        out_specs=row((block_b, 2 * N_PAD)),
    )

    out = pl.pallas_call(
        _fused_forward_kernel,
        out_shape=jax.ShapeDtypeStruct((bp, 2 * N_PAD), jnp.float32),
        grid_spec=grid_spec,
        compiler_params=pltpu.CompilerParams(
            dimension_semantics=("parallel",)),
    )(seed, cls_emb, img_feats,
      params["w_pooler"], params["b_pooler"],
      params["w_dock_bert"], params["b_dock_bert"],
      params["w_dock_clip"], params["b_dock_clip"],
      params["w_cls_pad"], params["b_cls_pad"])

    logits = out[:b, :N_CLS]
    probs = out[:b, N_PAD:N_PAD + N_CLS]
    return logits, probs


def init_params(key):
    ks = jax.random.split(key, 4)

    def lin(kw, fan_in, fan_out):
        scale = 1.0 / jnp.sqrt(jnp.float32(fan_in))
        w = jax.random.uniform(kw, (fan_in, fan_out), jnp.float32, -scale, scale)
        return w.astype(jnp.bfloat16)          # bf16 weight storage

    # classifier weight/bias padded to 128 lanes (zero cols, -1e9 pad bias)
    w_cls = lin(ks[3], H_T, N_CLS)
    w_cls_pad = jnp.zeros((H_T, N_PAD), jnp.bfloat16).at[:, :N_CLS].set(w_cls)
    b_cls_pad = jnp.full((1, N_PAD), _NEG_BIG, jnp.float32).at[:, :N_CLS].set(0.0)

    return {
        "w_pooler":    lin(ks[0], H_T, H_T),
        "b_pooler":    jnp.zeros((1, H_T), jnp.float32),
        "w_dock_bert": lin(ks[1], H_T, H_T),
        "b_dock_bert": jnp.full((1, H_T), 0.01, jnp.float32),
        "w_dock_clip": lin(ks[2], H_C, H_T),
        "b_dock_clip": jnp.full((1, H_T), 0.01, jnp.float32),
        "w_cls_pad":   w_cls_pad,
        "b_cls_pad":   b_cls_pad,
    }


if __name__ == "__main__":
    key = jax.random.PRNGKey(0)
    k_param, k_cls, k_img = jax.random.split(key, 3)

    params = init_params(k_param)

    # Stand-ins for the frozen pretrained encoders' outputs:
    #   cls_emb   : BERT last_hidden_state[:, 0, :] per text (one chunk/text)
    #   img_feats : CLIP get_image_features(pixel_values)
    cls_emb = jax.random.normal(k_cls, (BATCH, H_T), jnp.float32)
    img_feats = jax.random.normal(k_img, (BATCH, H_C), jnp.float32)

    # EmbraceNet modality-selection seed (mask drawn in-kernel).
    seed = jnp.array([1234], jnp.int32)

    logits, probs = model_forward(cls_emb, img_feats, seed, params)
    jax.block_until_ready((logits, probs))

    # Sanity: shapes, finiteness, probs == softmax(logits), rows sum to ~1.
    assert logits.shape == (BATCH, N_CLS)
    assert probs.shape == (BATCH, N_CLS)
    assert bool(jnp.all(jnp.isfinite(logits)))
    assert bool(jnp.all(jnp.isfinite(probs)))
    assert jnp.allclose(jnp.sum(probs, axis=1), 1.0, atol=1e-3)
    assert jnp.allclose(probs, jax.nn.softmax(logits, axis=1), atol=1e-3)

    print("KERNEL_OK")
</pallas_src>

<mosaic_0001>
module attributes {stable_mosaic.version = 11 : i64} {
  func.func @_fused_forward_kernel(%arg0: i32, %arg1: memref<1xi32, #tpu.memory_space<smem>>, %arg2: memref<8x256xf32, #tpu.memory_space<vmem>>, %arg3: memref<8x128xf32, #tpu.memory_space<vmem>>, %arg4: memref<256x256xbf16, #tpu.memory_space<vmem>>, %arg5: memref<1x256xf32, #tpu.memory_space<vmem>>, %arg6: memref<256x256xbf16, #tpu.memory_space<vmem>>, %arg7: memref<1x256xf32, #tpu.memory_space<vmem>>, %arg8: memref<128x256xbf16, #tpu.memory_space<vmem>>, %arg9: memref<1x256xf32, #tpu.memory_space<vmem>>, %arg10: memref<256x128xbf16, #tpu.memory_space<vmem>>, %arg11: memref<1x128xf32, #tpu.memory_space<vmem>>, %arg12: memref<8x256xf32, #tpu.memory_space<vmem>>) attributes {dimension_semantics = [#tpu.dimension_semantics<parallel>], iteration_bounds = array<i64: 1>, scalar_prefetch = 1 : i64, scratch_operands = 0 : i64, tpu.core_type = #tpu.core_type<tc>, window_params = [{transform_indices = @transform_0, window_bounds = array<i64: 8, 256>}, {transform_indices = @transform_1, window_bounds = array<i64: 8, 128>}, {pipeline_mode = #tpu.pipeline_mode<synchronous>, transform_indices = @transform_2, window_bounds = array<i64: 256, 256>}, {pipeline_mode = #tpu.pipeline_mode<synchronous>, transform_indices = @transform_3, window_bounds = array<i64: 1, 256>}, {pipeline_mode = #tpu.pipeline_mode<synchronous>, transform_indices = @transform_4, window_bounds = array<i64: 256, 256>}, {pipeline_mode = #tpu.pipeline_mode<synchronous>, transform_indices = @transform_5, window_bounds = array<i64: 1, 256>}, {pipeline_mode = #tpu.pipeline_mode<synchronous>, transform_indices = @transform_6, window_bounds = array<i64: 128, 256>}, {pipeline_mode = #tpu.pipeline_mode<synchronous>, transform_indices = @transform_7, window_bounds = array<i64: 1, 256>}, {pipeline_mode = #tpu.pipeline_mode<synchronous>, transform_indices = @transform_8, window_bounds = array<i64: 256, 128>}, {pipeline_mode = #tpu.pipeline_mode<synchronous>, transform_indices = @transform_9, window_bounds = array<i64: 1, 128>}, {transform_indices = @transform_10, window_bounds = array<i64: 8, 256>}]} {
    %c0 = arith.constant 0 : index
    %c0_0 = arith.constant 0 : index
    %0 = vector.load %arg2[%c0, %c0_0] : memref<8x256xf32, #tpu.memory_space<vmem>>, vector<8x256xf32>
    %1 = arith.truncf %0 : vector<8x256xf32> to vector<8x256xbf16>
    %c0_1 = arith.constant 0 : index
    %c0_2 = arith.constant 0 : index
    %2 = vector.load %arg4[%c0_1, %c0_2] : memref<256x256xbf16, #tpu.memory_space<vmem>>, vector<256x256xbf16>
    %cst = arith.constant dense<0.000000e+00> : vector<8x256xf32>
    %3 = tpu.matmul %1, %2, %cst {dimension_numbers = #tpu.dot_dimension_numbers<[1], [0], [0], [1], [0, 0, 1, 1], [], []>} : vector<8x256xbf16>, vector<256x256xbf16>, vector<8x256xf32> -> vector<8x256xf32>
    %c0_3 = arith.constant 0 : index
    %c0_4 = arith.constant 0 : index
    %4 = vector.load %arg5[%c0_3, %c0_4] : memref<1x256xf32, #tpu.memory_space<vmem>>, vector<1x256xf32>
    %5 = vector.broadcast %4 : vector<1x256xf32> to vector<8x256xf32>
    %6 = arith.addf %3, %5 : vector<8x256xf32>
    %7 = math.tanh %6 : vector<8x256xf32>
    %8 = arith.truncf %7 : vector<8x256xf32> to vector<8x256xbf16>
    %c0_5 = arith.constant 0 : index
    %c0_6 = arith.constant 0 : index
    %9 = vector.load %arg6[%c0_5, %c0_6] : memref<256x256xbf16, #tpu.memory_space<vmem>>, vector<256x256xbf16>
    %cst_7 = arith.constant dense<0.000000e+00> : vector<8x256xf32>
    %10 = tpu.matmul %8, %9, %cst_7 {dimension_numbers = #tpu.dot_dimension_numbers<[1], [0], [0], [1], [0, 0, 1, 1], [], []>} : vector<8x256xbf16>, vector<256x256xbf16>, vector<8x256xf32> -> vector<8x256xf32>
    %c0_8 = arith.constant 0 : index
    %c0_9 = arith.constant 0 : index
    %11 = vector.load %arg7[%c0_8, %c0_9] : memref<1x256xf32, #tpu.memory_space<vmem>>, vector<1x256xf32>
    %12 = vector.broadcast %11 : vector<1x256xf32> to vector<8x256xf32>
    %13 = arith.addf %10, %12 : vector<8x256xf32>
    %cst_10 = arith.constant 0.000000e+00 : f32
    %14 = vector.broadcast %cst_10 : f32 to vector<8x256xf32>
    %15 = arith.maximumf %13, %14 : vector<8x256xf32>
    %c0_11 = arith.constant 0 : index
    %c0_12 = arith.constant 0 : index
    %16 = vector.load %arg3[%c0_11, %c0_12] : memref<8x128xf32, #tpu.memory_space<vmem>>, vector<8x128xf32>
    %17 = math.tanh %16 : vector<8x128xf32>
    %18 = arith.truncf %17 : vector<8x128xf32> to vector<8x128xbf16>
    %c0_13 = arith.constant 0 : index
    %c0_14 = arith.constant 0 : index
    %19 = vector.load %arg8[%c0_13, %c0_14] : memref<128x256xbf16, #tpu.memory_space<vmem>>, vector<128x256xbf16>
    %cst_15 = arith.constant dense<0.000000e+00> : vector<8x256xf32>
    %20 = tpu.matmul %18, %19, %cst_15 {dimension_numbers = #tpu.dot_dimension_numbers<[1], [0], [0], [1], [0, 0, 1, 1], [], []>} : vector<8x128xbf16>, vector<128x256xbf16>, vector<8x256xf32> -> vector<8x256xf32>
    %c0_16 = arith.constant 0 : index
    %c0_17 = arith.constant 0 : index
    %21 = vector.load %arg9[%c0_16, %c0_17] : memref<1x256xf32, #tpu.memory_space<vmem>>, vector<1x256xf32>
    %22 = vector.broadcast %21 : vector<1x256xf32> to vector<8x256xf32>
    %23 = arith.addf %20, %22 : vector<8x256xf32>
    %cst_18 = arith.constant 0.000000e+00 : f32
    %24 = vector.broadcast %cst_18 : f32 to vector<8x256xf32>
    %25 = arith.maximumf %23, %24 : vector<8x256xf32>
    %c0_19 = arith.constant 0 : index
    %26 = memref.load %arg1[%c0_19] : memref<1xi32, #tpu.memory_space<smem>>
    %c8_i32 = arith.constant 8 : i32
    %27 = arith.muli %arg0, %c8_i32 : i32
    %28 = tpu.iota {dimensions = array<i32: 0>} : vector<8x256xi32>
    %29 = tpu.iota {dimensions = array<i32: 1>} : vector<8x256xi32>
    %30 = vector.broadcast %27 : i32 to vector<8x256xi32>
    %31 = arith.addi %28, %30 : vector<8x256xi32>
    %c256_i32 = arith.constant 256 : i32
    %32 = vector.broadcast %c256_i32 : i32 to vector<8x256xi32>
    %33 = arith.muli %31, %32 : vector<8x256xi32>
    %34 = arith.addi %33, %29 : vector<8x256xi32>
    %c-1640531527_i32 = arith.constant -1640531527 : i32
    %35 = arith.muli %26, %c-1640531527_i32 : i32
    %36 = vector.broadcast %35 : i32 to vector<8x256xi32>
    %37 = arith.xori %34, %36 : vector<8x256xi32>
    %c16_i32 = arith.constant 16 : i32
    %38 = vector.broadcast %c16_i32 : i32 to vector<8x256xi32>
    %39 = arith.shrui %37, %38 : vector<8x256xi32>
    %40 = arith.xori %37, %39 : vector<8x256xi32>
    %c2146121005_i32 = arith.constant 2146121005 : i32
    %41 = vector.broadcast %c2146121005_i32 : i32 to vector<8x256xi32>
    %42 = arith.muli %40, %41 : vector<8x256xi32>
    %c15_i32 = arith.constant 15 : i32
    %43 = vector.broadcast %c15_i32 : i32 to vector<8x256xi32>
    %44 = arith.shrui %42, %43 : vector<8x256xi32>
    %45 = arith.xori %42, %44 : vector<8x256xi32>
    %c-2073254261_i32 = arith.constant -2073254261 : i32
    %46 = vector.broadcast %c-2073254261_i32 : i32 to vector<8x256xi32>
    %47 = arith.muli %45, %46 : vector<8x256xi32>
    %c16_i32_20 = arith.constant 16 : i32
    %48 = vector.broadcast %c16_i32_20 : i32 to vector<8x256xi32>
    %49 = arith.shrui %47, %48 : vector<8x256xi32>
    %50 = arith.xori %47, %49 : vector<8x256xi32>
    %c1_i32 = arith.constant 1 : i32
    %51 = vector.broadcast %c1_i32 : i32 to vector<8x256xi32>
    %52 = arith.andi %50, %51 : vector<8x256xi32>
    %c0_i32 = arith.constant 0 : i32
    %53 = vector.broadcast %c0_i32 : i32 to vector<8x256xi32>
    %54 = arith.cmpi ne, %52, %53 : vector<8x256xi32>
    %55 = arith.select %54, %25, %15 : vector<8x256xi1>, vector<8x256xf32>
    %56 = arith.truncf %55 : vector<8x256xf32> to vector<8x256xbf16>
    %c0_21 = arith.constant 0 : index
    %c0_22 = arith.constant 0 : index
    %57 = vector.load %arg10[%c0_21, %c0_22] : memref<256x128xbf16, #tpu.memory_space<vmem>>, vector<256x128xbf16>
    %cst_23 = arith.constant dense<0.000000e+00> : vector<8x128xf32>
    %58 = tpu.matmul %56, %57, %cst_23 {dimension_numbers = #tpu.dot_dimension_numbers<[1], [0], [0], [1], [0, 0, 1, 1], [], []>} : vector<8x256xbf16>, vector<256x128xbf16>, vector<8x128xf32> -> vector<8x128xf32>
    %c0_24 = arith.constant 0 : index
    %c0_25 = arith.constant 0 : index
    %59 = vector.load %arg11[%c0_24, %c0_25] : memref<1x128xf32, #tpu.memory_space<vmem>>, vector<1x128xf32>
    %60 = vector.broadcast %59 : vector<1x128xf32> to vector<8x128xf32>
    %61 = arith.addf %58, %60 : vector<8x128xf32>
    %cst_26 = arith.constant dense<0xFF800000> : vector<8xf32>
    %62 = vector.multi_reduction <maximumf>, %61, %cst_26 [1] : vector<8x128xf32> to vector<8xf32>
    %63 = vector.shape_cast %62 : vector<8xf32> to vector<8x1xf32>
    %64 = vector.broadcast %63 : vector<8x1xf32> to vector<8x128xf32>
    %65 = arith.subf %61, %64 : vector<8x128xf32>
    %66 = math.exp %65 : vector<8x128xf32>
    %cst_27 = arith.constant dense<0.000000e+00> : vector<8xf32>
    %67 = vector.multi_reduction <add>, %66, %cst_27 [1] : vector<8x128xf32> to vector<8xf32>
    %68 = vector.shape_cast %67 : vector<8xf32> to vector<8x1xf32>
    %69 = vector.broadcast %68 : vector<8x1xf32> to vector<8x128xf32>
    %70 = arith.divf %66, %69 : vector<8x128xf32>
    %c0_28 = arith.constant 0 : index
    %c0_29 = arith.constant 0 : index
    %71 = vector.load %arg12[%c0_28, %c0_29] : memref<8x256xf32, #tpu.memory_space<vmem>>, vector<8x128xf32>
    tpu.vector_store %arg12[%c0_28, %c0_29], %61 {strides = array<i32>} : memref<8x256xf32, #tpu.memory_space<vmem>>, vector<8x128xf32>,
    %c0_30 = arith.constant 0 : index
    %c128 = arith.constant 128 : index
    %72 = vector.load %arg12[%c0_30, %c128] : memref<8x256xf32, #tpu.memory_space<vmem>>, vector<8x128xf32>
    tpu.vector_store %arg12[%c0_30, %c128], %70 {strides = array<i32>} : memref<8x256xf32, #tpu.memory_space<vmem>>, vector<8x128xf32>,
    return
  }
  func.func @transform_0(%arg0: i32, %arg1: memref<1xi32, #tpu.memory_space<smem>>) -> (i32, i32) {
    %c0_i32 = arith.constant 0 : i32
    %c0_i32_0 = arith.constant 0 : i32
    return %arg0, %c0_i32 : i32, i32
  }
  func.func @transform_1(%arg0: i32, %arg1: memref<1xi32, #tpu.memory_space<smem>>) -> (i32, i32) {
    %c0_i32 = arith.constant 0 : i32
    %c0_i32_0 = arith.constant 0 : i32
    return %arg0, %c0_i32 : i32, i32
  }
  func.func @transform_2(%arg0: i32, %arg1: memref<1xi32, #tpu.memory_space<smem>>) -> (i32, i32) {
    %c0_i32 = arith.constant 0 : i32
    %c0_i32_0 = arith.constant 0 : i32
    %c0_i32_1 = arith.constant 0 : i32
    return %c0_i32, %c0_i32_0 : i32, i32
  }
  func.func @transform_3(%arg0: i32, %arg1: memref<1xi32, #tpu.memory_space<smem>>) -> (i32, i32) {
    %c0_i32 = arith.constant 0 : i32
    %c0_i32_0 = arith.constant 0 : i32
    %c0_i32_1 = arith.constant 0 : i32
    return %c0_i32, %c0_i32_0 : i32, i32
  }
  func.func @transform_4(%arg0: i32, %arg1: memref<1xi32, #tpu.memory_space<smem>>) -> (i32, i32) {
    %c0_i32 = arith.constant 0 : i32
    %c0_i32_0 = arith.constant 0 : i32
    %c0_i32_1 = arith.constant 0 : i32
    return %c0_i32, %c0_i32_0 : i32, i32
  }
  func.func @transform_5(%arg0: i32, %arg1: memref<1xi32, #tpu.memory_space<smem>>) -> (i32, i32) {
    %c0_i32 = arith.constant 0 : i32
    %c0_i32_0 = arith.constant 0 : i32
    %c0_i32_1 = arith.constant 0 : i32
    return %c0_i32, %c0_i32_0 : i32, i32
  }
  func.func @transform_6(%arg0: i32, %arg1: memref<1xi32, #tpu.memory_space<smem>>) -> (i32, i32) {
    %c0_i32 = arith.constant 0 : i32
    %c0_i32_0 = arith.constant 0 : i32
    %c0_i32_1 = arith.constant 0 : i32
    return %c0_i32, %c0_i32_0 : i32, i32
  }
  func.func @transform_7(%arg0: i32, %arg1: memref<1xi32, #tpu.memory_space<smem>>) -> (i32, i32) {
    %c0_i32 = arith.constant 0 : i32
    %c0_i32_0 = arith.constant 0 : i32
    %c0_i32_1 = arith.constant 0 : i32
    return %c0_i32, %c0_i32_0 : i32, i32
  }
  func.func @transform_8(%arg0: i32, %arg1: memref<1xi32, #tpu.memory_space<smem>>) -> (i32, i32) {
    %c0_i32 = arith.constant 0 : i32
    %c0_i32_0 = arith.constant 0 : i32
    %c0_i32_1 = arith.constant 0 : i32
    return %c0_i32, %c0_i32_0 : i32, i32
  }
  func.func @transform_9(%arg0: i32, %arg1: memref<1xi32, #tpu.memory_space<smem>>) -> (i32, i32) {
    %c0_i32 = arith.constant 0 : i32
    %c0_i32_0 = arith.constant 0 : i32
    %c0_i32_1 = arith.constant 0 : i32
    return %c0_i32, %c0_i32_0 : i32, i32
  }
  func.func @transform_10(%arg0: i32, %arg1: memref<1xi32, #tpu.memory_space<smem>>) -> (i32, i32) {
    %c0_i32 = arith.constant 0 : i32
    %c0_i32_0 = arith.constant 0 : i32
    return %arg0, %c0_i32 : i32, i32
  }
}

</mosaic_0001>

<bundles_post_ra>
// kernel: tpu_custom_call.1
= control target key start
LH: loop header
LB: loop body
LE: loop exit
PB: predicated region body
PF: predicated region fallthrough
CT: control target
= control target key end

     0   :  { %17 = vsyncpa [#allocation5], 0  ;;  %s1646_s0 = inlined_call_operand.<no memory space> [shape: s32[1], index: 0, kind: input, shape index: {}]   ;;  %s1647_s1 = inlined_call_operand.hbm [shape: f32[8,256], index: 1, kind: input, shape index: {}]   ;;  %s1648_s2 = inlined_call_operand.hbm [shape: f32[8,128], index: 2, kind: input, shape index: {}]   ;;  %s1649_s3 = inlined_call_operand.hbm [shape: bf16[256,256], index: 3, kind: input, shape index: {}]   ;;  %s1650_s4 = inlined_call_operand.vmem [shape: f32[1,256], index: 4, kind: input, shape index: {}]   ;;  %s1651_s5 = inlined_call_operand.hbm [shape: bf16[256,256], index: 5, kind: input, shape index: {}]   ;;  %s1652_s6 = inlined_call_operand.vmem [shape: f32[1,256], index: 6, kind: input, shape index: {}]   ;;  %s1653_s7 = inlined_call_operand.hbm [shape: bf16[128,256], index: 7, kind: input, shape index: {}]   ;;  %s1654_s8 = inlined_call_operand.vmem [shape: f32[1,256], index: 8, kind: input, shape index: {}]   ;;  %s1655_s9 = inlined_call_operand.hbm [shape: bf16[256,128], index: 9, kind: input, shape index: {}]   ;;  %s1656_s10 = inlined_call_operand.vmem [shape: f32[1,128], index: 10, kind: input, shape index: {}]   ;;  %s1657_s11 = inlined_call_operand.hbm [shape: f32[8,256], index: 11, kind: output, shape index: {}]  }
   0x1   :  { %18 = vsyncpa [#allocation8], 0 }
   0x2   :  { %19 = vsyncpa [#allocation11], 0 }
   0x3   :  { %20 = vsyncpa [#allocation14], 0 }
   0x4   :  { %21 = vsyncpa [#allocation6], 0  ;;  %s1456_s17 = smov [#allocation7]   ;;  %s1292_s21 = scalar_lea.hbm %s1648_s2, 128 }
   0x5   :  { %s38_s18 = sshll.u32 %s1456_s17, 4  ;;  %p1293_p0 = scmp.ne.s32.totalorder %s1648_s2, %s1292_s21  ;;  %s39_s18 = int_to_ptr.vmem [resolvable:$true] %s38_s18 }
   0x6   :  { %p1296_p1 = scmp.lt.u32.totalorder %s1292_s21, %s1648_s2 }
   0x8   :  { %p1298_p2 = pnand %p1296_p1, %p1293_p0 }
   0xa   :  { %1301 = shalt.err (!%p1298_p2)
}
   0xb   :  { %s1302_s26 = scalar_lea.vmem %s39_s18, 128  ;;  %p1307_p4 = scmp.lt.s32.totalorder %s39_s18, %s39_s18 }
   0xc   :  { %p1303_p3 = scmp.ne.s32.totalorder %s39_s18, %s1302_s26  ;;  %p1308_p5 = scmp.lt.s32.totalorder %s1302_s26, %s1302_s26 }
   0xe   :  { %p1309_p6 = por %p1308_p5, %p1307_p4 }
  0x10   :  { %p1310_p7 = pnand %p1309_p6, %p1303_p3 }
  0x12   :  { %1313 = shalt.err (!%p1310_p7)
}
  0x13   :  { %41 = dma.hbm_to_vmem [thread:$0]  %s1648_s2, 128, %s39_s18, [#allocation8]  }
  0x14   :  { %s1457_s29 = smov [#allocation10]   ;;  %s1458_s12 = smov [#allocation4]  }
  0x15   :  { %s61_s30 = sshll.u32 %s1457_s29, 4  ;;  %s28_s13 = sshll.u32 %s1458_s12, 4  ;;  %s62_s30 = int_to_ptr.vmem [resolvable:$true] %s61_s30  ;;  %s29_s13 = int_to_ptr.vmem [resolvable:$true] %s28_s13 }
  0x16   :  { %s1314_s16 = scalar_lea.hbm %s1651_s5, 4096 }
  0x17   :  { %p1315_p8 = scmp.ne.s32.totalorder %s1651_s5, %s1314_s16  ;;  %p1318_p9 = scmp.lt.u32.totalorder %s1314_s16, %s1651_s5 }
  0x19   :  { %p1320_p10 = pnand %p1318_p9, %p1315_p8 }
  0x1b   :  { %1323 = shalt.err (!%p1320_p10)
}
  0x1c   :  { %s1324_s2 = scalar_lea.vmem %s62_s30, 4096  ;;  %p1329_p12 = scmp.lt.s32.totalorder %s62_s30, %s62_s30 }
  0x1d   :  { %p1325_p11 = scmp.ne.s32.totalorder %s62_s30, %s1324_s2  ;;  %p1330_p13 = scmp.lt.s32.totalorder %s1324_s2, %s1324_s2 }
  0x1f   :  { %p1331_p0 = por %p1330_p13, %p1329_p12 }
  0x21   :  { %p1332_p1 = pnand %p1331_p0, %p1325_p11 }
  0x23   :  { %1335 = shalt.err (!%p1332_p1)
}
  0x24   :  { %s1459_s18 = smov 128   ;;  %s1460_s22 = smov 8  }
  0x25   :  { %67 = dma.hbm_to_vmem [thread:$0]  %s1651_s5, 4096, %s62_s30, [#allocation11], %s1459_s18, %s1459_s18, %s1460_s22  }
  0x26   :  { %s1336_s27 = scalar_lea.hbm %s1647_s1, 256 }
  0x27   :  { %p1337_p2 = scmp.ne.s32.totalorder %s1647_s1, %s1336_s27  ;;  %p1340_p3 = scmp.lt.u32.totalorder %s1336_s27, %s1647_s1 }
  0x29   :  { %p1342_p4 = pnand %p1340_p3, %p1337_p2 }
  0x2b   :  { %1345 = shalt.err (!%p1342_p4)
}
  0x2c   :  { %s1346_s15 = scalar_lea.vmem %s29_s13, 256  ;;  %p1351_p6 = scmp.lt.s32.totalorder %s29_s13, %s29_s13 }
  0x2d   :  { %p1347_p5 = scmp.ne.s32.totalorder %s29_s13, %s1346_s15  ;;  %p1352_p7 = scmp.lt.s32.totalorder %s1346_s15, %s1346_s15 }
  0x2f   :  { %p1353_p8 = por %p1352_p7, %p1351_p6 }
  0x31   :  { %p1354_p9 = pnand %p1353_p8, %p1347_p5 }
  0x33   :  { %1357 = shalt.err (!%p1354_p9)
}
  0x34   :  { %31 = dma.hbm_to_vmem [thread:$0]  %s1647_s1, 256, %s29_s13, [#allocation5]  }
  0x35   :  { %s1461_s16 = smov [#allocation9]   ;;  %s1462_s19 = smov [#allocation12]  }
  0x36   :  { %s47_s17 = sshll.u32 %s1461_s16, 4  ;;  %s75_s20 = sshll.u32 %s1462_s19, 4  ;;  %s48_s17 = int_to_ptr.vmem [resolvable:$true] %s47_s17  ;;  %s76_s20 = int_to_ptr.vmem [resolvable:$true] %s75_s20 }
  0x37   :  { %s1358_s23 = scalar_lea.hbm %s1649_s3, 4096 }
  0x38   :  { %p1359_p10 = scmp.ne.s32.totalorder %s1649_s3, %s1358_s23  ;;  %p1362_p11 = scmp.lt.u32.totalorder %s1358_s23, %s1649_s3 }
  0x3a   :  { %p1364_p12 = pnand %p1362_p11, %p1359_p10 }
  0x3c   :  { %1367 = shalt.err (!%p1364_p12)
}
  0x3d   :  { %s1368_s1 = scalar_lea.vmem %s48_s17, 4096  ;;  %p1373_p0 = scmp.lt.s32.totalorder %s48_s17, %s48_s17 }
  0x3e   :  { %p1369_p13 = scmp.ne.s32.totalorder %s48_s17, %s1368_s1  ;;  %p1374_p1 = scmp.lt.s32.totalorder %s1368_s1, %s1368_s1 }
  0x40   :  { %p1375_p2 = por %p1374_p1, %p1373_p0 }
  0x42   :  { %p1376_p3 = pnand %p1375_p2, %p1369_p13 }
  0x44   :  { %1379 = shalt.err (!%p1376_p3)
}
  0x45   :  { %53 = dma.hbm_to_vmem [thread:$0]  %s1649_s3, 4096, %s48_s17, [#allocation8], %s1459_s18, %s1459_s18, %s1460_s22  }
  0x46   :  { %s1380_s14 = scalar_lea.hbm %s1653_s7, 2048 }
  0x47   :  { %p1381_p4 = scmp.ne.s32.totalorder %s1653_s7, %s1380_s14  ;;  %p1384_p5 = scmp.lt.u32.totalorder %s1380_s14, %s1653_s7 }
  0x49   :  { %p1386_p6 = pnand %p1384_p5, %p1381_p4 }
  0x4b   :  { %1389 = shalt.err (!%p1386_p6)
}
  0x4c   :  { %s1390_s19 = scalar_lea.vmem %s76_s20, 2048  ;;  %p1395_p8 = scmp.lt.s32.totalorder %s76_s20, %s76_s20 }
  0x4d   :  { %p1391_p7 = scmp.ne.s32.totalorder %s76_s20, %s1390_s19  ;;  %p1396_p9 = scmp.lt.s32.totalorder %s1390_s19, %s1390_s19 }
  0x4f   :  { %p1397_p10 = por %p1396_p9, %p1395_p8 }
  0x51   :  { %p1398_p11 = pnand %p1397_p10, %p1391_p7 }
  0x53   :  { %1401 = shalt.err (!%p1398_p11)
}
  0x54   :  { %81 = dma.hbm_to_vmem [thread:$0]  %s1653_s7, 2048, %s76_s20, [#allocation11], %s1459_s18, %s1459_s18, %s1460_s22  }
  0x55   :  { %s1463_s21 = smov [#allocation13]   ;;  %s1402_s25 = scalar_lea.hbm %s1655_s9, 2048 }
  0x56   :  { %s89_s2 = sshll.u32 %s1463_s21, 4  ;;  %p1403_p12 = scmp.ne.s32.totalorder %s1655_s9, %s1402_s25  ;;  %s90_s2 = int_to_ptr.vmem [resolvable:$true] %s89_s2 }
  0x57   :  { %p1406_p13 = scmp.lt.u32.totalorder %s1402_s25, %s1655_s9 }
  0x59   :  { %p1408_p0 = pnand %p1406_p13, %p1403_p12 }
  0x5b   :  { %1411 = shalt.err (!%p1408_p0)
}
  0x5c   :  { %s1412_s28 = scalar_lea.vmem %s90_s2, 2048  ;;  %p1417_p2 = scmp.lt.s32.totalorder %s90_s2, %s90_s2 }
  0x5d   :  { %p1413_p1 = scmp.ne.s32.totalorder %s90_s2, %s1412_s28  ;;  %p1418_p3 = scmp.lt.s32.totalorder %s1412_s28, %s1412_s28 }
  0x5f   :  { %p1419_p4 = por %p1418_p3, %p1417_p2 }
  0x61   :  { %p1420_p5 = pnand %p1419_p4, %p1413_p1 }
  0x63   :  { %1423 = shalt.err (!%p1420_p5)
}
  0x64   :  { %s1464_s7 = smov 64   ;;  %s1465_s18 = smov 4  }
  0x65   :  { %95 = dma.hbm_to_vmem [thread:$0]  %s1655_s9, 2048, %s90_s2, [#allocation14], %s1464_s7, %s1464_s7, %s1465_s18  }
  0x66   :  { %1446 = dma.done.wait [#allocation5], 256  }
  0x67   :  { %1447 = vsyncadd [#allocation5], 4294967040 }
  0x68   :  { %1448 = dma.done.wait [#allocation8], 4224  }
  0x69   :  { %1449 = vsyncadd [#allocation8], 4294963072 }
  0x6a   :  { %1450 = dma.done.wait [#allocation11], 6144  }
  0x6b   :  { %1451 = vsyncadd [#allocation11], 4294961152 }
  0x6c   :  { %1452 = dma.done.wait [#allocation14], 2048  }
  0x6d   :  { %1453 = vsyncadd [#allocation14], 4294965248  ;;  %v1146_v0 = vld [vmem:[#allocation9 + $0x4] ss:$8 sps:$4 sm:$0xff]   ;;  %v1148_v1 = vld [vmem:[#allocation9] ss:$8 sps:$4 sm:$0xff]  }
  0x6e   :  { %325 = vmatprep.subr.bf16.mxu0 %v1146_v0  ;;  %v1149_v2 = vld [vmem:[#allocation9 + $0x14] ss:$8 sps:$4 sm:$0xff]   ;;  %v1151_v3 = vld [vmem:[#allocation9 + $0x10] ss:$8 sps:$4 sm:$0xff]   ;;  %v1152_v4 = vld [vmem:[#allocation9 + $0x24] ss:$8 sps:$4 sm:$0xff]  }
  0x6f   :  { %326 = vmatpush1.bf16.msra.mxu0 %v1148_v1  ;;  %v1154_v5 = vld [vmem:[#allocation9 + $0x20] ss:$8 sps:$4 sm:$0xff]   ;;  %v1155_v6 = vld [vmem:[#allocation9 + $0x34] ss:$8 sps:$4 sm:$0xff]   ;;  %v1157_v7 = vld [vmem:[#allocation9 + $0x30] ss:$8 sps:$4 sm:$0xff]  }
  0x70   :  { %327 = vmatprep.subr.bf16.mxu0 %v1149_v2  ;;  %v1158_v8 = vld [vmem:[#allocation9 + $0x44] ss:$8 sps:$4 sm:$0xff]   ;;  %v1160_v9 = vld [vmem:[#allocation9 + $0x40] ss:$8 sps:$4 sm:$0xff]   ;;  %v1161_v10 = vld [vmem:[#allocation9 + $0x54] ss:$8 sps:$4 sm:$0xff]  }
  0x71   :  { %v1163_v11 = vld [vmem:[#allocation9 + $0x50] ss:$8 sps:$4 sm:$0xff]   ;;  %v1164_v12 = vld [vmem:[#allocation9 + $0x64] ss:$8 sps:$4 sm:$0xff]   ;;  %v1166_v13 = vld [vmem:[#allocation9 + $0x60] ss:$8 sps:$4 sm:$0xff]  }
  0x72   :  { %v118_v14 = vld [vmem:[#allocation4 + $0x8] sm:$0xff]  ;;  %v1194_v16 = vld [vmem:[#allocation10 + $0x4] ss:$8 sps:$4 sm:$0xff]   ;;  %v1196_v17 = vld [vmem:[#allocation10] ss:$8 sps:$4 sm:$0xff]   ;;  %s1467_s16 = smov [#allocation15]  }
  0x73   :  { %328 = vmatpush1.bf16.msra.mxu0 %v1151_v3  ;;  %v120_v15 = vpack.c.bf16 %v118_v14, %v118_v14  ;;  %v1167_v18 = vld [vmem:[#allocation9 + $0x74] ss:$8 sps:$4 sm:$0xff]   ;;  %v1169_v20 = vld [vmem:[#allocation9 + $0x70] ss:$8 sps:$4 sm:$0xff]   ;;  %574 = vmatprep.subr.bf16.mxu1 %v1194_v16  ;;  %v1200_v22 = vld [vmem:[#allocation10 + $0x24] ss:$8 sps:$4 sm:$0xff]  }
  0x74   :  { %329 = vmatprep.subr.bf16.mxu0 %v1152_v4  ;;  %v1197_v19 = vld [vmem:[#allocation10 + $0x14] ss:$8 sps:$4 sm:$0xff]   ;;  %575 = vmatpush1.bf16.msra.mxu1 %v1196_v17  ;;  %v1199_v21 = vld [vmem:[#allocation10 + $0x10] ss:$8 sps:$4 sm:$0xff]   ;;  %v1170_v23 = vld [vmem:[#allocation9 + $0x84] ss:$8 sps:$4 sm:$0xff]  }
  0x75   :  { %357 = vmatprep.mubr.bf16.mxu0 %v120_v15  ;;  %576 = vmatprep.subr.bf16.mxu1 %v1197_v19  ;;  %v1172_v24 = vld [vmem:[#allocation9 + $0x80] ss:$8 sps:$4 sm:$0xff]   ;;  %v1203_v26 = vld [vmem:[#allocation10 + $0x34] ss:$8 sps:$4 sm:$0xff]   ;;  %v1175_v28 = vld [vmem:[#allocation9 + $0x90] ss:$8 sps:$4 sm:$0xff]  }
  0x76   :  { %v1202_v25 = vld [vmem:[#allocation10 + $0x20] ss:$8 sps:$4 sm:$0xff]   ;;  %v1173_v27 = vld [vmem:[#allocation9 + $0x94] ss:$8 sps:$4 sm:$0xff]   ;;  %v1205_v29 = vld [vmem:[#allocation10 + $0x30] ss:$8 sps:$4 sm:$0xff]  }
  0x77   :  { %330 = vmatpush1.bf16.msra.mxu0 %v1154_v5  ;;  %v1206_v30 = vld [vmem:[#allocation10 + $0x44] ss:$8 sps:$4 sm:$0xff]   ;;  %v1178_v32 = vld [vmem:[#allocation9 + $0xa0] ss:$8 sps:$4 sm:$0xff]   ;;  %v1209_v34 = vld [vmem:[#allocation10 + $0x54] ss:$8 sps:$4 sm:$0xff]  }
  0x78   :  { %331 = vmatprep.subr.bf16.mxu0 %v1155_v6  ;;  %577 = vmatpush1.bf16.msra.mxu1 %v1199_v21  ;;  %v1176_v31 = vld [vmem:[#allocation9 + $0xa4] ss:$8 sps:$4 sm:$0xff]   ;;  %v1208_v33 = vld [vmem:[#allocation10 + $0x40] ss:$8 sps:$4 sm:$0xff]   ;;  %v1179_v35 = vld [vmem:[#allocation9 + $0xb4] ss:$8 sps:$4 sm:$0xff]  }
  0x79   :  { %578 = vmatprep.subr.bf16.mxu1 %v1200_v22  ;;  %v1181_v36 = vld [vmem:[#allocation9 + $0xb0] ss:$8 sps:$4 sm:$0xff]   ;;  %v1212_v38 = vld [vmem:[#allocation10 + $0x64] ss:$8 sps:$4 sm:$0xff]   ;;  %v1214_v40 = vld [vmem:[#allocation10 + $0x60] ss:$8 sps:$4 sm:$0xff]  }
  0x7a   :  { %v1211_v37 = vld [vmem:[#allocation10 + $0x50] ss:$8 sps:$4 sm:$0xff]   ;;  %v1182_v39 = vld [vmem:[#allocation9 + $0xc4] ss:$8 sps:$4 sm:$0xff]   ;;  %v1184_v41 = vld [vmem:[#allocation9 + $0xc0] ss:$8 sps:$4 sm:$0xff]  }
  0x7b   :  { %332 = vmatpush1.bf16.msra.mxu0 %v1157_v7  ;;  %v1215_v42 = vld [vmem:[#allocation10 + $0x74] ss:$8 sps:$4 sm:$0xff]   ;;  %v1217_v44 = vld [vmem:[#allocation10 + $0x70] ss:$8 sps:$4 sm:$0xff]   ;;  %v1221_v46 = vld [vmem:[#allocation10 + $0x84] ss:$8 sps:$4 sm:$0xff]  }
  0x7c   :  { %333 = vmatprep.subr.bf16.mxu0 %v1158_v8  ;;  %579 = vmatpush1.bf16.msra.mxu1 %v1202_v25  ;;  %v1185_v43 = vld [vmem:[#allocation9 + $0xd4] ss:$8 sps:$4 sm:$0xff]   ;;  %v1187_v45 = vld [vmem:[#allocation9 + $0xd0] ss:$8 sps:$4 sm:$0xff]   ;;  %v1188_v47 = vld [vmem:[#allocation9 + $0xe4] ss:$8 sps:$4 sm:$0xff]   ;;  %v155_v25 = vlaneseq }
  0x7d   :  { %580 = vmatprep.subr.bf16.mxu1 %v1203_v26  ;;  %v1223_v48 = vld [vmem:[#allocation10 + $0x80] ss:$8 sps:$4 sm:$0xff]   ;;  %v1227_v50 = vld [vmem:[#allocation10 + $0x94] ss:$8 sps:$4 sm:$0xff]   ;;  %v1229_v52 = vld [vmem:[#allocation10 + $0x90] ss:$8 sps:$4 sm:$0xff]  }
  0x7e   :  { %v1190_v49 = vld [vmem:[#allocation9 + $0xe0] ss:$8 sps:$4 sm:$0xff]   ;;  %v1191_v51 = vld [vmem:[#allocation9 + $0xf4] ss:$8 sps:$4 sm:$0xff]   ;;  %v1193_v53 = vld [vmem:[#allocation9 + $0xf0] ss:$8 sps:$4 sm:$0xff]  }
  0x7f   :  { %334 = vmatpush1.bf16.msra.mxu0 %v1160_v9  ;;  %v117_v54 = vld [vmem:[#allocation4] sm:$0xff]  ;;  %v1239_v60 = vld [vmem:[#allocation10 + $0xb4] ss:$8 sps:$4 sm:$0xff]   ;;  %v1241_v62 = vld [vmem:[#allocation10 + $0xb0] ss:$8 sps:$4 sm:$0xff]   ;;  %v156_v26 = vshrl.u32 %v155_v25, 7 }
  0x80   :  { %335 = vmatprep.subr.bf16.mxu0 %v1161_v10  ;;  %581 = vmatpush1.bf16.msra.mxu1 %v1205_v29  ;;  %v1233_v55 = vld [vmem:[#allocation10 + $0xa4] ss:$8 sps:$4 sm:$0xff]   ;;  %v119_v57 = vpack.c.bf16 %v117_v54, %v117_v54  ;;  %v1235_v58 = vld [vmem:[#allocation10 + $0xa0] ss:$8 sps:$4 sm:$0xff]   ;;  %v1226_v61 = vld [vmem:[#allocation12 + $0x14] ss:$8 sps:$4 sm:$0xff]  }
  0x81   :  { %582 = vmatprep.subr.bf16.mxu1 %v1206_v30  ;;  %v1220_v56 = vld [vmem:[#allocation12 + $0x4] ss:$8 sps:$4 sm:$0xff]   ;;  %v1218_v59 = vld [vmem:[#allocation12] ss:$8 sps:$4 sm:$0xff]   ;;  %v1224_v63 = vld [vmem:[#allocation12 + $0x10] ss:$8 sps:$4 sm:$0xff]  }
  0x82   :  { %v1232_v0 = vld [vmem:[#allocation12 + $0x24] ss:$8 sps:$4 sm:$0xff]   ;;  %v1230_v1 = vld [vmem:[#allocation12 + $0x20] ss:$8 sps:$4 sm:$0xff]   ;;  %v1238_v2 = vld [vmem:[#allocation12 + $0x34] ss:$8 sps:$4 sm:$0xff]  }
  0x83   :  { %336 = vmatpush1.bf16.msra.mxu0 %v1163_v11  ;;  %v1236_v3 = vld [vmem:[#allocation12 + $0x30] ss:$8 sps:$4 sm:$0xff]   ;;  %v1244_v4 = vld [vmem:[#allocation12 + $0x44] ss:$8 sps:$4 sm:$0xff]   ;;  %v1242_v5 = vld [vmem:[#allocation12 + $0x40] ss:$8 sps:$4 sm:$0xff]  }
  0x84   :  { %337 = vmatprep.subr.bf16.mxu0 %v1164_v12  ;;  %583 = vmatpush1.bf16.msra.mxu1 %v1208_v33  ;;  %v1245_v6 = vld [vmem:[#allocation10 + $0xc4] ss:$8 sps:$4 sm:$0xff]   ;;  %v1247_v7 = vld [vmem:[#allocation10 + $0xc0] ss:$8 sps:$4 sm:$0xff]   ;;  %v1250_v8 = vld [vmem:[#allocation12 + $0x54] ss:$8 sps:$4 sm:$0xff]  }
  0x85   :  { %584 = vmatprep.subr.bf16.mxu1 %v1209_v34  ;;  %v617_v9 = vld [vmem:[#allocation7] sm:$0xff]  ;;  %v1254_v14 = vld [vmem:[#allocation12 + $0x60] ss:$8 sps:$4 sm:$0xff]   ;;  %v1257_v15 = vld [vmem:[#allocation10 + $0xe4] ss:$8 sps:$4 sm:$0xff]   ;;  %v1614_v29 = vsub.s32 1, %v156_v26 }
  0x86   :  { %v1248_v10 = vld [vmem:[#allocation12 + $0x50] ss:$8 sps:$4 sm:$0xff]   ;;  %1282 = vtanh.f32 %v617_v9  ;;  %v1251_v11 = vld [vmem:[#allocation10 + $0xd4] ss:$8 sps:$4 sm:$0xff]   ;;  %v1259_v16 = vld [vmem:[#allocation10 + $0xe0] ss:$8 sps:$4 sm:$0xff]  }
  0x87   :  { %338 = vmatpush1.bf16.msra.mxu0 %v1166_v13  ;;  %v1253_v12 = vld [vmem:[#allocation10 + $0xd0] ss:$8 sps:$4 sm:$0xff]   ;;  %v1256_v13 = vld [vmem:[#allocation12 + $0x64] ss:$8 sps:$4 sm:$0xff]   ;;  %v1262_v17 = vld [vmem:[#allocation12 + $0x74] ss:$8 sps:$4 sm:$0xff]  }
  0x88   :  { %339 = vmatprep.subr.bf16.mxu0 %v1167_v18  ;;  %585 = vmatpush1.bf16.msra.mxu1 %v1211_v37  ;;  %v1260_v18 = vld [vmem:[#allocation12 + $0x70] ss:$8 sps:$4 sm:$0xff]   ;;  %s783_s14 = smul.u32 2654435769, %s1646_s0  ;;  %s1003_s19 = sshll.u32 %s1467_s16, 4  ;;  %s1004_s19 = int_to_ptr.vmem [resolvable:$true] %s1003_s19 }
  0x89   :  { %586 = vmatprep.subr.bf16.mxu1 %v1212_v38  ;;  %v1265_v21 = vld [vmem:[#allocation10 + $0xf0] ss:$8 sps:$4 sm:$0xff]   ;;  %p1429_p7 = scmp.lt.s32.totalorder %s1004_s19, %s1004_s19 }
  0x8b   :  { %340 = vmatpush1.bf16.msra.mxu0 %v1169_v20  ;;  %v1263_v20 = vld [vmem:[#allocation10 + $0xf4] ss:$8 sps:$4 sm:$0xff]  }
  0x8c   :  { %341 = vmatprep.subr.bf16.mxu0 %v1170_v23  ;;  %587 = vmatpush1.bf16.msra.mxu1 %v1214_v40  ;;  %v1466_v23 = vmov 0  }
  0x8d   :  { %588 = vmatprep.subr.bf16.mxu1 %v1215_v42 }
  0x8f   :  { %342 = vmatpush1.bf16.msra.mxu0 %v1172_v24  ;;  %v1266_v24 = vld [vmem:[#allocation13 + $0x40] sm:$0xff]  }
  0x90   :  { %343 = vmatprep.subr.bf16.mxu0 %v1173_v27  ;;  %589 = vmatpush1.bf16.msra.mxu1 %v1217_v44  ;;  %v1283_v19 = vpop.eup %1282  ;;  %v1609_v27 = vsub.s32 0, %v156_v26  ;;  %v1269_v44 = vld [vmem:[#allocation13 + $0x8] sm:$0xff]  }
  0x91   :  { %590 = vmatprep.subr.bf16.mxu1 %v1221_v46  ;;  %v619_v22 = vpack.c.bf16 %v1283_v19, %v1283_v19  ;;  %v1271_v46 = vld [vmem:[#allocation13 + $0x10] sm:$0xff]  }
  0x93   :  { %344 = vmatpush1.bf16.msra.mxu0 %v1175_v28  ;;  %v153_v28 = vld [vmem:[%s1650_s4] sm:$0x3] }
  0x94   :  { %345 = vmatprep.subr.bf16.mxu0 %v1176_v31  ;;  %591 = vmatpush1.bf16.msra.mxu1 %v1223_v48  ;;  %v158_v30 = vrot.slane %v153_v28, %v1609_v27  ;;  %v162_v31 = vrot.slane %v153_v28, %v1614_v29  ;;  %v1273_v48 = vld [vmem:[#allocation13 + $0x18] sm:$0xff]  }
  0x95   :  { %592 = vmatprep.subr.bf16.mxu1 %v1227_v50  ;;  %v1275_v50 = vld [vmem:[#allocation13 + $0x20] sm:$0xff]  }
  0x97   :  { %346 = vmatpush1.bf16.msra.mxu0 %v1178_v32 }
  0x98   :  { %347 = vmatprep.subr.bf16.mxu0 %v1179_v35  ;;  %593 = vmatpush1.bf16.msra.mxu1 %v1229_v52  ;;  %v1277_v52 = vld [vmem:[#allocation13 + $0x28] sm:$0xff]  }
  0x99   :  { %594 = vmatprep.subr.bf16.mxu1 %v1233_v55 }
  0x9b   :  { %348 = vmatpush1.bf16.msra.mxu0 %v1181_v36 }
  0x9c   :  { %349 = vmatprep.subr.bf16.mxu0 %v1182_v39  ;;  %595 = vmatpush1.bf16.msra.mxu1 %v1235_v58  ;;  %v1279_v58 = vld [vmem:[#allocation13 + $0x30] sm:$0xff]  }
  0x9d   :  { %596 = vmatprep.subr.bf16.mxu1 %v1239_v60  ;;  %v1281_v60 = vld [vmem:[#allocation13 + $0x38] sm:$0xff]  }
  0x9f   :  { %350 = vmatpush1.bf16.msra.mxu0 %v1184_v41  ;;  %v1267_v41 = vld [vmem:[#allocation13] sm:$0xff]  }
  0xa0   :  { %351 = vmatprep.subr.bf16.mxu0 %v1185_v43  ;;  %597 = vmatpush1.bf16.msra.mxu1 %v1241_v62  ;;  %v1268_v43 = vld [vmem:[#allocation13 + $0x48] sm:$0xff]   ;;  %v780_v62 = vmul.u32 256, %v156_v26 }
  0xa1   :  { %598 = vmatprep.subr.bf16.mxu1 %v1245_v6 }
  0xa3   :  { %352 = vmatpush1.bf16.msra.mxu0 %v1187_v45  ;;  %v1270_v45 = vld [vmem:[#allocation13 + $0x50] sm:$0xff]  }
  0xa4   :  { %353 = vmatprep.subr.bf16.mxu0 %v1188_v47  ;;  %599 = vmatpush1.bf16.msra.mxu1 %v1247_v7  ;;  %v1272_v47 = vld [vmem:[#allocation13 + $0x58] sm:$0xff]  }
  0xa5   :  { %600 = vmatprep.subr.bf16.mxu1 %v1251_v11 }
  0xa7   :  { %354 = vmatpush1.bf16.msra.mxu0 %v1190_v49  ;;  %v1274_v49 = vld [vmem:[#allocation13 + $0x60] sm:$0xff]  }
  0xa8   :  { %355 = vmatprep.subr.bf16.mxu0 %v1191_v51  ;;  %601 = vmatpush1.bf16.msra.mxu1 %v1253_v12  ;;  %v1276_v51 = vld [vmem:[#allocation13 + $0x68] sm:$0xff]  }
  0xa9   :  { %602 = vmatprep.subr.bf16.mxu1 %v1257_v15 }
  0xab   :  { %356 = vmatpush1.bf16.msra.mxu0 %v1193_v53 }
  0xac   :  { %728 = vmatprep.subr.bf16.mxu0 %v1220_v56  ;;  %603 = vmatpush1.bf16.msra.mxu1 %v1259_v16 }
  0xad   :  { %604 = vmatprep.subr.bf16.mxu1 %v1263_v20 }
  0xae   :  { %358 = vmatmul.mubr.bf16.vlgmr.msra.gmra.mrb[0].mxu0 %v119_v57  ;;  %v1278_v57 = vld [vmem:[#allocation13 + $0x70] sm:$0xff]  }
  0xaf   :  { %729 = vmatpush1.bf16.msra.mxu0 %v1218_v59  ;;  %760 = vmatprep.mubr.bf16.mxu0 %v1466_v23  ;;  %v1280_v59 = vld [vmem:[#allocation13 + $0x78] sm:$0xff]  }
  0xb0   :  { %730 = vmatprep.subr.bf16.mxu0 %v1226_v61  ;;  %605 = vmatpush1.bf16.msra.mxu1 %v1265_v21  ;;  %v776_v61 = vand.u32 127, %v155_v25 }
  0xb1   :  { %1112 = vmatprep.subr.bf16.mxu1 %v1266_v24 }
  0xb3   :  { %731 = vmatpush1.bf16.msra.mxu0 %v1224_v63  ;;  %v777_v63 = vadd.s32 128, %v776_v61 }
  0xb4   :  { %732 = vmatprep.subr.bf16.mxu0 %v1232_v0  ;;  %v781_v0 = vadd.s32 %v780_v62, %v776_v61 }
  0xb7   :  { %733 = vmatpush1.bf16.msra.mxu0 %v1230_v1  ;;  %v784_v1 = vstv %s783_s14 }
  0xb8   :  { %734 = vmatprep.subr.bf16.mxu0 %v1238_v2  ;;  %v782_v2 = vadd.s32 %v780_v62, %v777_v63 }
  0xbb   :  { %735 = vmatpush1.bf16.msra.mxu0 %v1236_v3  ;;  %v785_v3 = vxor.u32 %v784_v1, %v781_v0 }
  0xbc   :  { %736 = vmatprep.subr.bf16.mxu0 %v1244_v4  ;;  %v786_v4 = vxor.u32 %v784_v1, %v782_v2 }
  0xbe   :  { %v788_v6 = vshrl.u32 %v786_v4, 16 }
  0xbf   :  { %737 = vmatpush1.bf16.msra.mxu0 %v1242_v5  ;;  %v787_v5 = vshrl.u32 %v785_v3, 16 }
  0xc0   :  { %738 = vmatprep.subr.bf16.mxu0 %v1250_v8  ;;  %v790_v8 = vxor.u32 %v788_v6, %v786_v4 }
  0xc1   :  { %v789_v7 = vxor.u32 %v787_v5, %v785_v3 }
  0xc3   :  { %739 = vmatpush1.bf16.msra.mxu0 %v1248_v10  ;;  %v791_v9 = vmul.u32 2146121005, %v789_v7  ;;  %v792_v10 = vmul.u32 2146121005, %v790_v8 }
  0xc4   :  { %740 = vmatprep.subr.bf16.mxu0 %v1256_v13 }
  0xc5   :  { %v793_v11 = vshrl.u32 %v791_v9, 15  ;;  %v794_v12 = vshrl.u32 %v792_v10, 15 }
  0xc7   :  { %741 = vmatpush1.bf16.msra.mxu0 %v1254_v14  ;;  %v795_v13 = vxor.u32 %v793_v11, %v791_v9  ;;  %v796_v14 = vxor.u32 %v794_v12, %v792_v10 }
  0xc8   :  { %742 = vmatprep.subr.bf16.mxu0 %v1262_v17  ;;  %v636_v17 = vld [vmem:[%s1654_s8] sm:$0x3] }
  0xc9   :  { %v797_v15 = vmul.u32 2221713035, %v795_v13  ;;  %v798_v16 = vmul.u32 2221713035, %v796_v14  ;;  %v641_v20 = vrot.slane %v636_v17, %v1609_v27  ;;  %v645_v21 = vrot.slane %v636_v17, %v1614_v29 }
  0xcb   :  { %743 = vmatpush1.bf16.msra.mxu0 %v1260_v18  ;;  %v799_v18 = vshrl.u32 %v797_v15, 16  ;;  %v800_v19 = vshrl.u32 %v798_v16, 16 }
  0xcd   :  { %v801_v23 = vxor.u32 %v799_v18, %v797_v15  ;;  %v802_v24 = vxor.u32 %v800_v19, %v798_v16 }
  0xce   :  { %761 = vmatmul.mubr.bf16.vlgmr.msra.gmra.mrb[4].mxu0 %v619_v22  ;;  %v402_v22 = vld [vmem:[%s1652_s6] sm:$0x3] }
  0xcf   :  { %v407_v26 = vrot.slane %v402_v22, %v1609_v27 }
 0x181   :  { %v359_v32 = vpop.f32.mrb[0].mxu0 }
 0x182   :  { %v360_v33 = vadd.f32 %v359_v32, %v158_v30  ;;  %v361_v34 = vpop.f32.mrb[1].mxu0  ;;  %v803_v30 = vand.u32 1, %v801_v23  ;;  %v804_v32 = vand.u32 1, %v802_v24 }
 0x183   :  { %v362_v35 = vadd.f32 %v361_v34, %v162_v31  ;;  %v363_v36 = vpop.f32.mrb[2].mxu0  ;;  %v411_v31 = vrot.slane %v402_v22, %v1614_v29 }
 0x184   :  { %1284 = vtanh.f32 %v360_v33  ;;  %v364_v37 = vpop.f32.mrb[3].mxu0  ;;  %vm805_vm0 = vcmp.ne.s32.totalorder %v803_v30, 0  ;;  %vm806_vm1 = vcmp.ne.s32.totalorder %v804_v32, 0 }
 0x185   :  { %1286 = vtanh.f32 %v362_v35 }
 0x18e   :  { %v1285_v38 = vpop.eup %1284 }
 0x18f   :  { %v1287_v39 = vpop.eup %1286  ;;  %v368_v42 = vpack.c.bf16 %v1285_v38, %v1285_v38 }
 0x190   :  { %v369_v40 = vpack.c.bf16 %v1287_v39, %v1287_v39 }
 0x192   :  { %606 = vmatprep.mubr.bf16.mxu1 %v369_v40 }
 0x193   :  { %607 = vmatmul.mubr.bf16.vlgmr.msra.gmra.mrb[0].mxu1 %v368_v42 }
 0x194   :  { %1113 = vmatpush3.bf16.msra.mxu1 %v1267_v41 }
 0x195   :  { %1114 = vmatprep.subr.bf16.mxu1 %v1268_v43 }
 0x198   :  { %1115 = vmatpush3.bf16.msra.mxu1 %v1269_v44 }
 0x199   :  { %1116 = vmatprep.subr.bf16.mxu1 %v1270_v45 }
 0x19c   :  { %1117 = vmatpush3.bf16.msra.mxu1 %v1271_v46  ;;  %v1095_v46 = vld [vmem:[%s1656_s10] ss:$0 sm:$0xff]  ;;  %s1424_s10 = scalar_lea.vmem %s1004_s19, 256 }
 0x19d   :  { %1118 = vmatprep.subr.bf16.mxu1 %v1272_v47  ;;  %p1425_p6 = scmp.ne.s32.totalorder %s1004_s19, %s1424_s10  ;;  %p1430_p8 = scmp.lt.s32.totalorder %s1424_s10, %s1424_s10 }
 0x19f   :  { %p1431_p9 = por %p1430_p8, %p1429_p7 }
 0x1a0   :  { %1119 = vmatpush3.bf16.msra.mxu1 %v1273_v48 }
 0x1a1   :  { %1120 = vmatprep.subr.bf16.mxu1 %v1274_v49  ;;  %v762_v53 = vpop.f32.mrb[4].mxu0  ;;  %p1432_p10 = pnand %p1431_p9, %p1425_p6 }
 0x1a2   :  { %v764_v54 = vpop.f32.mrb[5].mxu0  ;;  %v763_v25 = vadd.f32 %v762_v53, %v641_v20 }
 0x1a3   :  { %v766_v55 = vpop.f32.mrb[6].mxu0  ;;  %v765_v28 = vadd.f32 %v764_v54, %v645_v21 }
 0x1a4   :  { %1121 = vmatpush3.bf16.msra.mxu1 %v1275_v50  ;;  %v767_v56 = vpop.f32.mrb[7].mxu0  ;;  %v769_v34 = vmax.f32 %v763_v25, 0.0 }
 0x1a5   :  { %1122 = vmatprep.subr.bf16.mxu1 %v1276_v51  ;;  %v770_v37 = vmax.f32 %v765_v28, 0.0 }
 0x1a8   :  { %1123 = vmatpush3.bf16.msra.mxu1 %v1277_v52 }
 0x1a9   :  { %1124 = vmatprep.subr.bf16.mxu1 %v1278_v57 }
 0x1ac   :  { %1125 = vmatpush3.bf16.msra.mxu1 %v1279_v58 }
 0x1ad   :  { %1126 = vmatprep.subr.bf16.mxu1 %v1280_v59 }
 0x1b0   :  { %1127 = vmatpush3.bf16.msra.mxu1 %v1281_v60 }
 0x266   :  { %v608_v33 = vpop.f32.mrb[0].mxu1 }
 0x267   :  { %v609_v35 = vadd.f32 %v608_v33, %v407_v26  ;;  %v610_v36 = vpop.f32.mrb[1].mxu1 }
 0x268   :  { %v611_v38 = vadd.f32 %v610_v36, %v411_v31  ;;  %v612_v39 = vpop.f32.mrb[2].mxu1 }
 0x269   :  { %v615_v40 = vmax.f32 %v609_v35, 0.0  ;;  %v613_v41 = vpop.f32.mrb[3].mxu1 }
 0x26a   :  { %v616_v42 = vmax.f32 %v611_v38, 0.0 }
 0x26b   :  { %v807_v43 = vsel %vm805_vm0, %v769_v34, %v615_v40 }
 0x26c   :  { %v808_v44 = vsel %vm806_vm1, %v770_v37, %v616_v42  ;;  %v809_v45 = vpack.c.bf16 %v807_v43, %v807_v43 }
 0x26d   :  { %v810_v27 = vpack.c.bf16 %v808_v44, %v808_v44 }
 0x26f   :  { %978 = vmatprep.mubr.bf16.mxu1 %v810_v27 }
 0x270   :  { %979 = vmatmul.mubr.bf16.vlgmr.msra.gmra.mrb[4].mxu1 %v809_v45 }
 0x343   :  { %v1128_v29 = vpop.f32.mrb[4].mxu1 }
 0x344   :  { %v1129_v47 = vpop.f32.mrb[5].mxu1 }
 0x345   :  { %v1130_v48 = vadd.f32 %v1129_v47, %v1128_v29  ;;  %v1131_v49 = vpop.f32.mrb[6].mxu1 }
 0x346   :  { %v1132_v50 = vpop.f32.mrb[7].mxu1 }
 0x347   :  { %v981_v51 = vadd.f32 %v1130_v48, %v1095_v46 }
 0x349   :  { %995 = vst [vmem:[#allocation15] sm:$0xff] %v981_v51  ;;  %986 = vmax.xlane.f32.xlu0 %v981_v51 }
 0x3d6   :  { %v987_v52 = vpop.xlane.xlu0 %986 }
 0x3d7   :  { %v988_v53 = vsub.f32 %v981_v51, %v987_v52 }
 0x3d9   :  { %v989_v54 = vmul.f32 1.442695, %v988_v53 }
 0x3db   :  { %1288 = vpow2.f32 %v989_v54 }
 0x3e5   :  { %v1289_v55 = vpop.eup %1288 }
 0x3e6   :  { %991 = vadd.xlane.f32.xlu0 %v1289_v55 }
 0x473   :  { %v992_v56 = vpop.xlane.xlu0 %991 }
 0x474   :  { %1290 = vrcp.f32 %v992_v56 }
 0x47e   :  { %v1291_v57 = vpop.eup %1290 }
 0x47f   :  { %v994_v58 = vmul.f32 %v1291_v57, %v1289_v55 }
 0x481   :  { %996 = vst [vmem:[#allocation15 + $0x8] sm:$0xff] %v994_v58 }
 0x482   :  { %1435 = shalt.err (!%p1432_p10)
}
 0x483   :  { %s1436_s21 = scalar_lea.hbm %s1657_s11, 256 }
 0x484   :  { %p1437_p11 = scmp.ne.s32.totalorder %s1657_s11, %s1436_s21  ;;  %p1440_p12 = scmp.lt.u32.totalorder %s1436_s21, %s1657_s11 }
 0x486   :  { %p1442_p13 = pnand %p1440_p12, %p1437_p11 }
 0x488   :  { %1445 = shalt.err (!%p1442_p13)
}
 0x489   :  { %1006 = dma.vmem_to_hbm [thread:$0]  %s1004_s19, 256, %s1657_s11, [#allocation6]  }
 0x48a   :  { %1454 = dma.done.wait [#allocation6], 256  }
 0x48b   :  { %1455 = vsyncadd [#allocation6], 4294967040 }
 0x48c   :  { %1010 = vsyncpa [#allocation5], 1 }
 0x48d   :  { %1011 = vsyncpa [#allocation8], 1 }
 0x48e   :  { %1012 = vsyncpa [#allocation11], 1 }
 0x48f   :  { %1013 = vsyncpa [#allocation14], 1 }
 0x490   :  { %1014 = vsyncpa [#allocation6], 1 }

</bundles_post_ra>
